<compile_context>
chip_gen: v7x
topology: tpu7x:2x2x1
jax: 0.10.0
libtpu: 0.0.40
codegen_flags: <defaults>
</compile_context>

<pallas_src>
import jax
import jax.numpy as jnp
from jax.experimental import pallas as pl
from jax.experimental.pallas import tpu as pltpu

HIDDEN = 64   # fc1 / fc2 width (matches the PyTorch module)
NPAD = 128    # lane-dense padded output width (true out_dim sliced outside)


def _round_up(n, m):
    return ((n + m - 1) // m) * m


def dqn_kernel(x_ref, w1_ref, w2_ref, w3_ref, b_ref, o_ref):
    # b_ref: (3, NPAD) f32 packed biases -- row0=b1, row1=b2 (first HIDDEN lanes),
    # row2=b3 (zero-padded to NPAD).
    bias = b_ref[...]
    b1 = bias[0:1, 0:HIDDEN]
    b2 = bias[1:2, 0:HIDDEN]
    b3 = bias[2:3, :]

    # bf16 operands into the MXU, f32 accumulation; bias/ReLU on f32 vregs.
    x = x_ref[...].astype(jnp.bfloat16)
    h1 = jnp.dot(x, w1_ref[...], preferred_element_type=jnp.float32) + b1
    h1 = jnp.maximum(h1, 0.0).astype(jnp.bfloat16)
    h2 = jnp.dot(h1, w2_ref[...], preferred_element_type=jnp.float32) + b2
    h2 = jnp.maximum(h2, 0.0).astype(jnp.bfloat16)
    o_ref[...] = jnp.dot(h2, w3_ref[...], preferred_element_type=jnp.float32) + b3


def prepare_params(params):
    """Raw f32 (in,out)-layout params -> kernel-ready (bf16 weights, packed f32 bias)."""
    w1, b1, w2, b2, w3, b3 = params
    out_dim = w3.shape[1]
    w3p = jnp.zeros((w3.shape[0], NPAD), jnp.float32).at[:, :out_dim].set(w3)
    bias = jnp.zeros((3, NPAD), jnp.float32)
    bias = bias.at[0, :HIDDEN].set(b1.reshape(-1))
    bias = bias.at[1, :HIDDEN].set(b2.reshape(-1))
    bias = bias.at[2, :out_dim].set(b3.reshape(-1))
    return (w1.astype(jnp.bfloat16),
            w2.astype(jnp.bfloat16),
            w3p.astype(jnp.bfloat16),
            bias,
            out_dim)


def dqn_forward(x, kernel_params):
    w1, w2, w3p, bias, out_dim = kernel_params
    B, in_dim = x.shape

    # Batch tile: at tiny batches one block; at real DQN batches 512-row tiles
    # (double-buffered x/out DMA overlapped with the matmuls, weights resident).
    tb = 512 if B >= 512 else _round_up(B, 8)
    Bp = _round_up(B, tb)
    if Bp != B:
        x = jnp.pad(x, ((0, Bp - B), (0, 0)))

    grid = (Bp // tb,)
    flops = 2 * Bp * (in_dim * HIDDEN + HIDDEN * HIDDEN + HIDDEN * NPAD)
    bytes_accessed = (Bp * in_dim * 4            # x (f32 in HBM)
                      + w1.size * 2 + w2.size * 2 + w3p.size * 2   # bf16 weights
                      + bias.size * 4            # packed biases
                      + Bp * NPAD * 4)           # f32 output

    out = pl.pallas_call(
        dqn_kernel,
        out_shape=jax.ShapeDtypeStruct((Bp, NPAD), jnp.float32),
        grid=grid,
        in_specs=[
            pl.BlockSpec((tb, in_dim), lambda i: (i, 0)),       # x batch tile
            pl.BlockSpec((in_dim, HIDDEN), lambda i: (0, 0)),   # w1 (resident)
            pl.BlockSpec((HIDDEN, HIDDEN), lambda i: (0, 0)),   # w2 (resident)
            pl.BlockSpec((HIDDEN, NPAD), lambda i: (0, 0)),     # w3 padded (resident)
            pl.BlockSpec((3, NPAD), lambda i: (0, 0)),          # packed biases (resident)
        ],
        out_specs=pl.BlockSpec((tb, NPAD), lambda i: (i, 0)),   # lane-dense output
        compiler_params=pltpu.CompilerParams(
            dimension_semantics=("parallel",)),
        cost_estimate=pl.CostEstimate(
            flops=flops, transcendentals=0, bytes_accessed=bytes_accessed),
    )(x, w1, w2, w3p, bias)

    return out[:B, :out_dim]


def init_params(key, input_dim=4, hidden=HIDDEN, output_dim=5):
    ks = jax.random.split(key, 6)

    def lin(kw, kb, fan_in, fan_out):
        # deterministic uniform init, PyTorch-Linear-like bound 1/sqrt(fan_in)
        bound = 1.0 / jnp.sqrt(jnp.float32(fan_in))
        w = jax.random.uniform(kw, (fan_in, fan_out), jnp.float32, -bound, bound)
        b = jax.random.uniform(kb, (1, fan_out), jnp.float32, -bound, bound)
        return w, b

    w1, b1 = lin(ks[0], ks[1], input_dim, hidden)
    w2, b2 = lin(ks[2], ks[3], hidden, hidden)
    w3, b3 = lin(ks[4], ks[5], hidden, output_dim)
    return (w1, b1, w2, b2, w3, b3)


def dqn_reference(x, params):
    w1, b1, w2, b2, w3, b3 = params
    h1 = jnp.maximum(x @ w1 + b1, 0.0)
    h2 = jnp.maximum(h1 @ w2 + b2, 0.0)
    return h2 @ w3 + b3


if __name__ == "__main__":
    key = jax.random.PRNGKey(0)
    kx, kp = jax.random.split(key)

    batch, input_dim, output_dim = 8, 4, 5
    x = jax.random.normal(kx, (batch, input_dim), jnp.float32)
    params = init_params(kp, input_dim=input_dim, hidden=HIDDEN, output_dim=output_dim)
    kparams = prepare_params(params)

    out = dqn_forward(x, kparams)
    out = jax.block_until_ready(out)
    ref = dqn_reference(x, params)
    assert out.shape == (batch, output_dim)
    # bf16 weights/activations with f32 accumulation -> loosened tolerance.
    assert jnp.allclose(out, ref, atol=5e-2, rtol=5e-2), float(jnp.max(jnp.abs(out - ref)))

    # Exercise the batch-tiled "parallel" grid and ragged-batch padding path.
    x_big = jax.random.normal(kx, (1000, input_dim), jnp.float32)
    out_big = jax.block_until_ready(dqn_forward(x_big, kparams))
    ref_big = dqn_reference(x_big, params)
    assert out_big.shape == (1000, output_dim)
    assert jnp.allclose(out_big, ref_big, atol=5e-2, rtol=5e-2)

    print("KERNEL_OK")
</pallas_src>

<mosaic_0001>
module attributes {stable_mosaic.version = 11 : i64} {
  func.func @dqn_kernel(%arg0: i32, %arg1: memref<8x4xf32, #tpu.memory_space<vmem>>, %arg2: memref<4x64xbf16, #tpu.memory_space<vmem>>, %arg3: memref<64x64xbf16, #tpu.memory_space<vmem>>, %arg4: memref<64x128xbf16, #tpu.memory_space<vmem>>, %arg5: memref<3x128xf32, #tpu.memory_space<vmem>>, %arg6: memref<8x128xf32, #tpu.memory_space<vmem>>) attributes {dimension_semantics = [#tpu.dimension_semantics<parallel>], iteration_bounds = array<i64: 1>, scalar_prefetch = 0 : i64, scratch_operands = 0 : i64, tpu.core_type = #tpu.core_type<tc>, window_params = [{transform_indices = @transform_0, window_bounds = array<i64: 8, 4>}, {pipeline_mode = #tpu.pipeline_mode<synchronous>, transform_indices = @transform_1, window_bounds = array<i64: 4, 64>}, {pipeline_mode = #tpu.pipeline_mode<synchronous>, transform_indices = @transform_2, window_bounds = array<i64: 64, 64>}, {pipeline_mode = #tpu.pipeline_mode<synchronous>, transform_indices = @transform_3, window_bounds = array<i64: 64, 128>}, {pipeline_mode = #tpu.pipeline_mode<synchronous>, transform_indices = @transform_4, window_bounds = array<i64: 3, 128>}, {transform_indices = @transform_5, window_bounds = array<i64: 8, 128>}]} {
    %c0 = arith.constant 0 : index
    %c0_0 = arith.constant 0 : index
    %0 = vector.load %arg5[%c0, %c0_0] : memref<3x128xf32, #tpu.memory_space<vmem>>, vector<3x128xf32>
    %1 = vector.extract_strided_slice %0 {offsets = [0, 0], sizes = [1, 64], strides = [1, 1]} : vector<3x128xf32> to vector<1x64xf32>
    %2 = vector.extract_strided_slice %0 {offsets = [1, 0], sizes = [1, 64], strides = [1, 1]} : vector<3x128xf32> to vector<1x64xf32>
    %3 = vector.extract_strided_slice %0 {offsets = [2, 0], sizes = [1, 128], strides = [1, 1]} : vector<3x128xf32> to vector<1x128xf32>
    %c0_1 = arith.constant 0 : index
    %c0_2 = arith.constant 0 : index
    %4 = vector.load %arg1[%c0_1, %c0_2] : memref<8x4xf32, #tpu.memory_space<vmem>>, vector<8x4xf32>
    %5 = arith.truncf %4 : vector<8x4xf32> to vector<8x4xbf16>
    %c0_3 = arith.constant 0 : index
    %c0_4 = arith.constant 0 : index
    %6 = vector.load %arg2[%c0_3, %c0_4] : memref<4x64xbf16, #tpu.memory_space<vmem>>, vector<4x64xbf16>
    %cst = arith.constant dense<0.000000e+00> : vector<8x64xf32>
    %7 = tpu.matmul %5, %6, %cst {dimension_numbers = #tpu.dot_dimension_numbers<[1], [0], [0], [1], [0, 0, 1, 1], [], []>} : vector<8x4xbf16>, vector<4x64xbf16>, vector<8x64xf32> -> vector<8x64xf32>
    %8 = vector.broadcast %1 : vector<1x64xf32> to vector<8x64xf32>
    %9 = arith.addf %7, %8 : vector<8x64xf32>
    %cst_5 = arith.constant 0.000000e+00 : f32
    %10 = vector.broadcast %cst_5 : f32 to vector<8x64xf32>
    %11 = arith.maximumf %9, %10 : vector<8x64xf32>
    %12 = arith.truncf %11 : vector<8x64xf32> to vector<8x64xbf16>
    %c0_6 = arith.constant 0 : index
    %c0_7 = arith.constant 0 : index
    %13 = vector.load %arg3[%c0_6, %c0_7] : memref<64x64xbf16, #tpu.memory_space<vmem>>, vector<64x64xbf16>
    %cst_8 = arith.constant dense<0.000000e+00> : vector<8x64xf32>
    %14 = tpu.matmul %12, %13, %cst_8 {dimension_numbers = #tpu.dot_dimension_numbers<[1], [0], [0], [1], [0, 0, 1, 1], [], []>} : vector<8x64xbf16>, vector<64x64xbf16>, vector<8x64xf32> -> vector<8x64xf32>
    %15 = vector.broadcast %2 : vector<1x64xf32> to vector<8x64xf32>
    %16 = arith.addf %14, %15 : vector<8x64xf32>
    %cst_9 = arith.constant 0.000000e+00 : f32
    %17 = vector.broadcast %cst_9 : f32 to vector<8x64xf32>
    %18 = arith.maximumf %16, %17 : vector<8x64xf32>
    %19 = arith.truncf %18 : vector<8x64xf32> to vector<8x64xbf16>
    %c0_10 = arith.constant 0 : index
    %c0_11 = arith.constant 0 : index
    %20 = vector.load %arg4[%c0_10, %c0_11] : memref<64x128xbf16, #tpu.memory_space<vmem>>, vector<64x128xbf16>
    %cst_12 = arith.constant dense<0.000000e+00> : vector<8x128xf32>
    %21 = tpu.matmul %19, %20, %cst_12 {dimension_numbers = #tpu.dot_dimension_numbers<[1], [0], [0], [1], [0, 0, 1, 1], [], []>} : vector<8x64xbf16>, vector<64x128xbf16>, vector<8x128xf32> -> vector<8x128xf32>
    %22 = vector.broadcast %3 : vector<1x128xf32> to vector<8x128xf32>
    %23 = arith.addf %21, %22 : vector<8x128xf32>
    %c0_13 = arith.constant 0 : index
    %c0_14 = arith.constant 0 : index
    %24 = vector.load %arg6[%c0_13, %c0_14] : memref<8x128xf32, #tpu.memory_space<vmem>>, vector<8x128xf32>
    tpu.vector_store %arg6[%c0_13, %c0_14], %23 {strides = array<i32>} : memref<8x128xf32, #tpu.memory_space<vmem>>, vector<8x128xf32>,
    return
  }
  func.func @transform_0(%arg0: i32) -> (i32, i32) {
    %c0_i32 = arith.constant 0 : i32
    %c0_i32_0 = arith.constant 0 : i32
    return %arg0, %c0_i32 : i32, i32
  }
  func.func @transform_1(%arg0: i32) -> (i32, i32) {
    %c0_i32 = arith.constant 0 : i32
    %c0_i32_0 = arith.constant 0 : i32
    %c0_i32_1 = arith.constant 0 : i32
    return %c0_i32, %c0_i32_0 : i32, i32
  }
  func.func @transform_2(%arg0: i32) -> (i32, i32) {
    %c0_i32 = arith.constant 0 : i32
    %c0_i32_0 = arith.constant 0 : i32
    %c0_i32_1 = arith.constant 0 : i32
    return %c0_i32, %c0_i32_0 : i32, i32
  }
  func.func @transform_3(%arg0: i32) -> (i32, i32) {
    %c0_i32 = arith.constant 0 : i32
    %c0_i32_0 = arith.constant 0 : i32
    %c0_i32_1 = arith.constant 0 : i32
    return %c0_i32, %c0_i32_0 : i32, i32
  }
  func.func @transform_4(%arg0: i32) -> (i32, i32) {
    %c0_i32 = arith.constant 0 : i32
    %c0_i32_0 = arith.constant 0 : i32
    %c0_i32_1 = arith.constant 0 : i32
    return %c0_i32, %c0_i32_0 : i32, i32
  }
  func.func @transform_5(%arg0: i32) -> (i32, i32) {
    %c0_i32 = arith.constant 0 : i32
    %c0_i32_0 = arith.constant 0 : i32
    return %arg0, %c0_i32 : i32, i32
  }
}

</mosaic_0001>

<bundles_post_ra>
// kernel: tpu_custom_call.1
= control target key start
LH: loop header
LB: loop body
LE: loop exit
PB: predicated region body
PF: predicated region fallthrough
CT: control target
= control target key end

     0   :  { %10 = vsyncpa [#allocation3], 0  ;;  %s513_s0 = inlined_call_operand.vmem [shape: f32[8,4], index: 0, kind: input, shape index: {}]   ;;  %s514_s1 = inlined_call_operand.vmem [shape: bf16[4,64], index: 1, kind: input, shape index: {}]   ;;  %s515_s2 = inlined_call_operand.hbm [shape: bf16[64,64], index: 2, kind: input, shape index: {}]   ;;  %s516_s3 = inlined_call_operand.hbm [shape: bf16[64,128], index: 3, kind: input, shape index: {}]   ;;  %s517_s4 = inlined_call_operand.vmem [shape: f32[3,128], index: 4, kind: input, shape index: {}]   ;;  %s518_s5 = inlined_call_operand.hbm [shape: f32[8,128], index: 5, kind: output, shape index: {}]  }
   0x1   :  { %11 = vsyncpa [#allocation6], 0 }
   0x2   :  { %12 = vsyncpa [#allocation4], 0  ;;  %s426_s18 = smov [#allocation2]   ;;  %s354_s22 = scalar_lea.hbm %s515_s2, 512 }
   0x3   :  { %s22_s19 = sshll.u32 %s426_s18, 4  ;;  %p355_p0 = scmp.ne.s32.totalorder %s515_s2, %s354_s22  ;;  %s23_s19 = int_to_ptr.vmem [resolvable:$true] %s22_s19 }
   0x4   :  { %p358_p1 = scmp.lt.u32.totalorder %s354_s22, %s515_s2 }
   0x6   :  { %p360_p2 = pnand %p358_p1, %p355_p0 }
   0x8   :  { %363 = shalt.err (!%p360_p2)
}
   0x9   :  { %s364_s27 = scalar_lea.vmem %s23_s19, 512  ;;  %p369_p4 = scmp.lt.s32.totalorder %s23_s19, %s23_s19 }
   0xa   :  { %p365_p3 = scmp.ne.s32.totalorder %s23_s19, %s364_s27  ;;  %p370_p5 = scmp.lt.s32.totalorder %s364_s27, %s364_s27 }
   0xc   :  { %p371_p6 = por %p370_p5, %p369_p4 }
   0xe   :  { %p372_p7 = pnand %p371_p6, %p365_p3 }
  0x10   :  { %375 = shalt.err (!%p372_p7)
}
  0x11   :  { %s427_s28 = smov 64   ;;  %s428_s29 = smov 4  }
  0x12   :  { %28 = dma.hbm_to_vmem [thread:$0]  %s515_s2, 512, %s23_s19, [#allocation3], %s427_s28, %s427_s28, %s428_s29  }
  0x13   :  { %s429_s7 = smov [#allocation5]   ;;  %s376_s11 = scalar_lea.hbm %s516_s3, 512 }
  0x14   :  { %s34_s8 = sshll.u32 %s429_s7, 4  ;;  %p377_p8 = scmp.ne.s32.totalorder %s516_s3, %s376_s11  ;;  %s35_s8 = int_to_ptr.vmem [resolvable:$true] %s34_s8 }
  0x15   :  { %p380_p9 = scmp.lt.u32.totalorder %s376_s11, %s516_s3 }
  0x17   :  { %p382_p10 = pnand %p380_p9, %p377_p8 }
  0x19   :  { %385 = shalt.err (!%p382_p10)
}
  0x1a   :  { %s386_s16 = scalar_lea.vmem %s35_s8, 512  ;;  %p391_p12 = scmp.lt.s32.totalorder %s35_s8, %s35_s8 }
  0x1b   :  { %p387_p11 = scmp.ne.s32.totalorder %s35_s8, %s386_s16  ;;  %p392_p13 = scmp.lt.s32.totalorder %s386_s16, %s386_s16 }
  0x1d   :  { %p393_p0 = por %p392_p13, %p391_p12 }
  0x1f   :  { %p394_p1 = pnand %p393_p0, %p387_p11 }
  0x21   :  { %397 = shalt.err (!%p394_p1)
}
  0x22   :  { %40 = dma.hbm_to_vmem [thread:$0]  %s516_s3, 512, %s35_s8, [#allocation6], %s427_s28, %s427_s28, %s428_s29  }
  0x23   :  { %420 = dma.done.wait [#allocation3], 512  }
  0x24   :  { %421 = vsyncadd [#allocation3], 4294966784 }
  0x25   :  { %422 = dma.done.wait [#allocation6], 512  }
  0x26   :  { %423 = vsyncadd [#allocation6], 4294966784  ;;  %v430_v0 = vmov 0.0   ;;  %vm431_vm0 = vmmov 0   ;;  %vm62_vm1 = vcmask 1041408   ;;  %v51_v2 = vld [vmem:[%s513_s0] sm:$0xff]  ;;  %v54_v11 = vlaneseq }
  0x27   :  { %309 = vmatprep.subr.bf16.mxu0 %v430_v0  ;;  %311 = vmatprep.mubr.msk.bf16.mxu0 %vm431_vm0, %v430_v0  ;;  %v53_v1 = vld [vmem:[%s514_s1] sm:$0x3]  ;;  %v52_v4 = vpack.c.bf16 %v51_v2, %v51_v2  ;;  %vm58_vm2 = vcmask 31744   ;;  %v347_v6 = vld [vmem:[#allocation2 + $0x8] sm:$0xff]   ;;  %v348_v7 = vld [vmem:[#allocation2 + $0x10] sm:$0xff]   ;;  %vm144_vm3 = vcmask 523264  }
  0x28   :  { %315 = vmatprep.subr.bf16.mxu1 %v430_v0  ;;  %323 = vmatprep.mubr.msk.bf16.mxu1 %vm431_vm0, %v430_v0  ;;  %v64_v3 = vsel %vm62_vm1, %v53_v1, 0  ;;  %v346_v5 = vld [vmem:[#allocation2] sm:$0xff]   ;;  %v349_v8 = vld [vmem:[#allocation2 + $0x18] sm:$0xff]   ;;  %v351_v10 = vld [vmem:[#allocation5 + $0x8] sm:$0xff]   ;;  %v55_v12 = vshrl.u32 %v54_v11, 7  ;;  %s432_s3 = smov [#allocation7]  }
  0x29   :  { %310 = vmatpush3.bf16.msra.mxu0 %v64_v3  ;;  %316 = vmatpush3.bf16.msra.mxu1 %v346_v5  ;;  %v350_v9 = vld [vmem:[#allocation5] sm:$0xff]   ;;  %v352_v23 = vld [vmem:[#allocation5 + $0x10] sm:$0xff]   ;;  %v353_v24 = vld [vmem:[#allocation5 + $0x18] sm:$0xff]  }
  0x2a   :  { %327 = vmatprep.subr.bf16.mxu0 %v430_v0  ;;  %317 = vmatprep.subr.bf16.mxu1 %v430_v0  ;;  %v56_v13 = vsub.s32 0, %v55_v12  ;;  %v50_v14 = vld [vmem:[%s517_s4] sm:$0x7]  ;;  %v118_v25 = vsub.s32 1, %v55_v12  ;;  %v200_v34 = vsub.s32 2, %v55_v12  ;;  %s276_s4 = sshll.u32 %s432_s3, 4  ;;  %s277_s4 = int_to_ptr.vmem [resolvable:$true] %s276_s4 }
  0x2b   :  { %s398_s22 = scalar_lea.vmem %s277_s4, 128  ;;  %p403_p3 = scmp.lt.s32.totalorder %s277_s4, %s277_s4 }
  0x2c   :  { %312 = vmatmul.mubr.msk.bf16.vlgmr.msra.gmra.mrb[0].mxu0 %vm58_vm2, %v52_v4  ;;  %v57_v15 = vrot.slane %v50_v14, %v56_v13  ;;  %v119_v26 = vrot.slane %v50_v14, %v118_v25  ;;  %v201_v35 = vrot.slane %v50_v14, %v200_v34  ;;  %p399_p2 = scmp.ne.s32.totalorder %s277_s4, %s398_s22  ;;  %p404_p4 = scmp.lt.s32.totalorder %s398_s22, %s398_s22 }
  0x2d   :  { %335 = vmatprep.mubr.msk.bf16.mxu0 %vm431_vm0, %v430_v0  ;;  %318 = vmatpush3.bf16.msra.mxu1 %v347_v6 }
  0x2e   :  { %319 = vmatprep.subr.bf16.mxu1 %v430_v0  ;;  %328 = vmatpush3.bf16.msra.mxu0 %v350_v9  ;;  %p405_p5 = por %p404_p4, %p403_p3 }
  0x2f   :  { %329 = vmatprep.subr.bf16.mxu0 %v430_v0 }
  0x30   :  { %p406_p6 = pnand %p405_p5, %p399_p2 }
  0x31   :  { %320 = vmatpush3.bf16.msra.mxu1 %v348_v7 }
  0x32   :  { %321 = vmatprep.subr.bf16.mxu1 %v430_v0  ;;  %330 = vmatpush3.bf16.msra.mxu0 %v351_v10 }
  0x33   :  { %331 = vmatprep.subr.bf16.mxu0 %v430_v0 }
  0x35   :  { %322 = vmatpush3.bf16.msra.mxu1 %v349_v8 }
  0x36   :  { %332 = vmatpush3.bf16.msra.mxu0 %v352_v23 }
  0x37   :  { %333 = vmatprep.subr.bf16.mxu0 %v430_v0 }
  0x3a   :  { %334 = vmatpush3.bf16.msra.mxu0 %v353_v24 }
  0xff   :  { %v100_v16 = vpop.f32.mrb[0].mxu0 }
 0x100   :  { %v101_v17 = vadd.f32 %v100_v16, %v57_v15  ;;  %v313_v18 = vpop.f32.mrb[1].mxu0 }
 0x101   :  { %v103_v19 = vpop.f32.mrb[2].mxu0 }
 0x102   :  { %v106_v20 = vmax.f32 %v101_v17, 0.0  ;;  %v314_v21 = vpop.f32.mrb[3].mxu0 }
 0x104   :  { %v107_v22 = vpack.c.bf16 %v106_v20, %v106_v20 }
 0x106   :  { %324 = vmatmul.mubr.msk.bf16.vlgmr.msra.gmra.mrb[0].mxu1 %vm144_vm3, %v107_v22 }
 0x1d9   :  { %v182_v27 = vpop.f32.mrb[0].mxu1 }
 0x1da   :  { %v183_v28 = vadd.f32 %v182_v27, %v119_v26  ;;  %v325_v29 = vpop.f32.mrb[1].mxu1 }
 0x1db   :  { %v185_v30 = vpop.f32.mrb[2].mxu1 }
 0x1dc   :  { %v188_v31 = vmax.f32 %v183_v28, 0.0  ;;  %v326_v32 = vpop.f32.mrb[3].mxu1 }
 0x1de   :  { %v189_v33 = vpack.c.bf16 %v188_v31, %v188_v31 }
 0x1e0   :  { %336 = vmatmul.mubr.msk.bf16.vlgmr.msra.gmra.mrb[4].mxu0 %vm144_vm3, %v189_v33 }
 0x2b3   :  { %v263_v36 = vpop.f32.mrb[4].mxu0 }
 0x2b4   :  { %v264_v37 = vadd.f32 %v263_v36, %v201_v35  ;;  %v337_v38 = vpop.f32.mrb[5].mxu0 }
 0x2b5   :  { %v266_v39 = vpop.f32.mrb[6].mxu0 }
 0x2b6   :  { %269 = vst [vmem:[#allocation7] sm:$0xff] %v264_v37  ;;  %v338_v40 = vpop.f32.mrb[7].mxu0 }
 0x2b7   :  { %409 = shalt.err (!%p406_p6)
}
 0x2b8   :  { %s410_s25 = scalar_lea.hbm %s518_s5, 128 }
 0x2b9   :  { %p411_p7 = scmp.ne.s32.totalorder %s518_s5, %s410_s25  ;;  %p414_p8 = scmp.lt.u32.totalorder %s410_s25, %s518_s5 }
 0x2bb   :  { %p416_p9 = pnand %p414_p8, %p411_p7 }
 0x2bd   :  { %419 = shalt.err (!%p416_p9)
}
 0x2be   :  { %279 = dma.vmem_to_hbm [thread:$0]  %s277_s4, 128, %s518_s5, [#allocation4]  }
 0x2bf   :  { %424 = dma.done.wait [#allocation4], 128  }
 0x2c0   :  { %425 = vsyncadd [#allocation4], 4294967168 }
 0x2c1   :  { %283 = vsyncpa [#allocation3], 1 }
 0x2c2   :  { %284 = vsyncpa [#allocation6], 1 }
 0x2c3   :  { %285 = vsyncpa [#allocation4], 1 }

</bundles_post_ra>
